<compile_context>
chip_gen: v5e
topology: v5e:2x2
jax: 0.10.0
libtpu: 0.0.40
codegen_flags: <defaults>
</compile_context>

<pallas_src>
import math

import jax
import jax.numpy as jnp
from jax.experimental import pallas as pl
from jax.experimental.pallas import tpu as pltpu


def _dense_kernel(x_ref, w_ref, o_ref):
    # x_ref: (tm, tk)  w_ref: (tk, tn)  o_ref: (tm, tn) f32, resident across K.
    @pl.when(pl.program_id(2) == 0)
    def _():
        o_ref[...] = jnp.zeros_like(o_ref)

    o_ref[...] += jnp.dot(
        x_ref[...], w_ref[...], preferred_element_type=jnp.float32
    )


def _dense_bias_kernel(x_ref, w_ref, b_ref, o_ref):
    # Same as above, but the k==0 init is the broadcast bias (fused, no extra pass).
    @pl.when(pl.program_id(2) == 0)
    def _():
        o_ref[...] = jnp.broadcast_to(b_ref[...], o_ref.shape).astype(o_ref.dtype)

    o_ref[...] += jnp.dot(
        x_ref[...], w_ref[...], preferred_element_type=jnp.float32
    )


def _round_up(x, m):
    return (x + m - 1) // m * m


def _pick_k_tile(kp, cap):
    """Largest multiple of 128 that exactly divides kp (a multiple of 128) and is <= cap."""
    cap = max(cap, 128)
    q = kp // 128
    best = 1
    d = 1
    while d * d <= q:
        if q % d == 0:
            for c in (d, q // d):
                if c * 128 <= cap:
                    best = max(best, c)
        d += 1
    return best * 128


def dense(x, weight, bias=None, *, tm=1024, tn=1024, tk=1024):
    """Pallas implementation of Dense.forward: x @ weight [+ bias] (f32 result)."""
    M, K = x.shape
    Kw, N = weight.shape
    assert K == Kw, (K, Kw)

    # Minimal hardware-alignment padding (sublane=8 on rows, lane=128 on the
    # contraction and output-feature dims).  No dtype cast, no rounding up to
    # whole tile multiples; skipped entirely when already aligned.
    Mp = _round_up(M, 8)
    Kp = _round_up(K, 128)
    Np = _round_up(N, 128)
    if (Mp, Kp) != (M, K):
        x = jnp.pad(x, ((0, Mp - M), (0, Kp - K)))
    if (Kp, Np) != (K, N):
        weight = jnp.pad(weight, ((0, Kp - K), (0, Np - N)))

    # Tiles: clamp to the problem.  M / N edges are handled by a cdiv grid with
    # masked edge blocks; the K tile must divide the padded K exactly so that
    # no out-of-bounds garbage is accumulated into valid outputs.
    tm = min(tm, Mp)
    tn = min(tn, Np)
    tk = _pick_k_tile(Kp, tk)

    grid = (pl.cdiv(Mp, tm), pl.cdiv(Np, tn), Kp // tk)

    in_specs = [
        pl.BlockSpec((tm, tk), lambda i, j, k: (i, k)),
        pl.BlockSpec((tk, tn), lambda i, j, k: (k, j)),
    ]
    args = [x, weight]
    if bias is not None:
        b = bias.reshape(1, N)
        if Np != N:
            b = jnp.pad(b, ((0, 0), (0, Np - N)))
        in_specs.append(pl.BlockSpec((1, tn), lambda i, j, k: (0, j)))
        args.append(b)
        kernel = _dense_bias_kernel
    else:
        kernel = _dense_kernel

    # Scoped-VMEM budget from the actual (double-buffered) tile footprint.
    x_isz = jnp.dtype(x.dtype).itemsize
    w_isz = jnp.dtype(weight.dtype).itemsize
    tile_bytes = 2 * (tm * tk * x_isz + tk * tn * w_isz + tm * tn * 4)
    if bias is not None:
        tile_bytes += 2 * tn * 4
    vmem_limit = int(min(max(tile_bytes * 5 // 4, 16 * 2**20), 60 * 2**20))

    out_padded = pl.pallas_call(
        kernel,
        out_shape=jax.ShapeDtypeStruct((Mp, Np), jnp.float32),
        grid_spec=pltpu.PrefetchScalarGridSpec(
            num_scalar_prefetch=0,
            grid=grid,
            in_specs=in_specs,
            out_specs=pl.BlockSpec((tm, tn), lambda i, j, k: (i, j)),
        ),
        compiler_params=pltpu.CompilerParams(
            dimension_semantics=("parallel", "parallel", "arbitrary"),
            vmem_limit_bytes=vmem_limit,
        ),
    )(*args)

    if (Mp, Np) != (M, N):
        return out_padded[:M, :N]
    return out_padded


if __name__ == "__main__":
    # Small shapes consistent with the module: a batch of graph representations
    # compressed from in_features to out_features.
    M = 8
    in_features = 16
    out_features = 32

    key = jax.random.PRNGKey(0)
    k_x, k_w, k_b = jax.random.split(key, 3)

    x = jax.random.normal(k_x, (M, in_features), dtype=jnp.float32)

    # reset_parameters(): stdv = 1/sqrt(out_features); weight ~ U(-stdv, stdv).
    stdv = 1.0 / math.sqrt(out_features)
    weight = jax.random.uniform(
        k_w, (in_features, out_features), dtype=jnp.float32,
        minval=-stdv, maxval=stdv,
    )

    # Module default: bias=False.
    out = jax.block_until_ready(dense(x, weight, None))
    ref = x @ weight
    assert out.shape == (M, out_features)
    assert jnp.allclose(out, ref, atol=1e-5, rtol=1e-5), "mismatch (no bias)"

    # Also exercise the bias=True path.
    bias = jax.random.uniform(
        k_b, (out_features,), dtype=jnp.float32, minval=-stdv, maxval=stdv
    )
    out_b = jax.block_until_ready(dense(x, weight, bias))
    ref_b = x @ weight + bias
    assert jnp.allclose(out_b, ref_b, atol=1e-5, rtol=1e-5), "mismatch (bias)"

    print("KERNEL_OK")
</pallas_src>

<mosaic_0001>
module attributes {stable_mosaic.version = 11 : i64} {
  func.func @_dense_kernel(%arg0: i32, %arg1: i32, %arg2: i32, %arg3: memref<8x128xf32, #tpu.memory_space<vmem>>, %arg4: memref<128x128xf32, #tpu.memory_space<vmem>>, %arg5: memref<8x128xf32, #tpu.memory_space<vmem>>) attributes {dimension_semantics = [#tpu.dimension_semantics<parallel>, #tpu.dimension_semantics<parallel>, #tpu.dimension_semantics<arbitrary>], iteration_bounds = array<i64: 1, 1, 1>, scalar_prefetch = 0 : i64, scratch_operands = 0 : i64, tpu.core_type = #tpu.core_type<tc>, window_params = [{transform_indices = @transform_0, window_bounds = array<i64: 8, 128>}, {transform_indices = @transform_1, window_bounds = array<i64: 128, 128>}, {transform_indices = @transform_2, window_bounds = array<i64: 8, 128>}]} {
    %c0_i32 = arith.constant 0 : i32
    %0 = arith.cmpi eq, %arg2, %c0_i32 : i32
    %1 = arith.extui %0 : i1 to i32
    %c0_i32_0 = arith.constant 0 : i32
    %2 = arith.cmpi ne, %1, %c0_i32_0 : i32
    scf.if %2 {
      %cst_8 = arith.constant 0.000000e+00 : f32
      %9 = vector.broadcast %cst_8 : f32 to vector<8x128xf32>
      %c0_9 = arith.constant 0 : index
      %c0_10 = arith.constant 0 : index
      %10 = vector.load %arg5[%c0_9, %c0_10] : memref<8x128xf32, #tpu.memory_space<vmem>>, vector<8x128xf32>
      tpu.vector_store %arg5[%c0_9, %c0_10], %9 {strides = array<i32>} : memref<8x128xf32, #tpu.memory_space<vmem>>, vector<8x128xf32>,
    } else {
    }
    %c0 = arith.constant 0 : index
    %c0_1 = arith.constant 0 : index
    %3 = vector.load %arg5[%c0, %c0_1] : memref<8x128xf32, #tpu.memory_space<vmem>>, vector<8x128xf32>
    %c0_2 = arith.constant 0 : index
    %c0_3 = arith.constant 0 : index
    %4 = vector.load %arg3[%c0_2, %c0_3] : memref<8x128xf32, #tpu.memory_space<vmem>>, vector<8x128xf32>
    %c0_4 = arith.constant 0 : index
    %c0_5 = arith.constant 0 : index
    %5 = vector.load %arg4[%c0_4, %c0_5] : memref<128x128xf32, #tpu.memory_space<vmem>>, vector<128x128xf32>
    %cst = arith.constant dense<0.000000e+00> : vector<8x128xf32>
    %6 = tpu.matmul %4, %5, %cst {dimension_numbers = #tpu.dot_dimension_numbers<[1], [0], [0], [1], [0, 0, 1, 1], [], []>} : vector<8x128xf32>, vector<128x128xf32>, vector<8x128xf32> -> vector<8x128xf32>
    %7 = arith.addf %3, %6 : vector<8x128xf32>
    %c0_6 = arith.constant 0 : index
    %c0_7 = arith.constant 0 : index
    %8 = vector.load %arg5[%c0_6, %c0_7] : memref<8x128xf32, #tpu.memory_space<vmem>>, vector<8x128xf32>
    tpu.vector_store %arg5[%c0_6, %c0_7], %7 {strides = array<i32>} : memref<8x128xf32, #tpu.memory_space<vmem>>, vector<8x128xf32>,
    return
  }
  func.func @transform_0(%arg0: i32, %arg1: i32, %arg2: i32) -> (i32, i32) {
    %c0_i32 = arith.constant 0 : i32
    return %arg0, %arg2 : i32, i32
  }
  func.func @transform_1(%arg0: i32, %arg1: i32, %arg2: i32) -> (i32, i32) {
    %c0_i32 = arith.constant 0 : i32
    return %arg2, %arg1 : i32, i32
  }
  func.func @transform_2(%arg0: i32, %arg1: i32, %arg2: i32) -> (i32, i32) {
    %c0_i32 = arith.constant 0 : i32
    return %arg0, %arg1 : i32, i32
  }
}

</mosaic_0001>

<bundles_post_ra>
// kernel: tpu_custom_call.1
= control target key start
LH: loop header
LB: loop body
LE: loop exit
PB: predicated region body
PF: predicated region fallthrough
CT: control target
= control target key end

     0   :  { %7 = vsyncpa [#allocation3], 0  ;;  %s218_s0 = inlined_call_operand.hbm [shape: f32[8,128], index: 0, kind: input, shape index: {}]   ;;  %s219_s1 = inlined_call_operand.hbm [shape: f32[128,128], index: 1, kind: input, shape index: {}]   ;;  %s220_s2 = inlined_call_operand.hbm [shape: f32[8,128], index: 2, kind: output, shape index: {}]  }
   0x1   :  { %8 = vsyncpa [#allocation6], 0 }
   0x2   :  { %9 = vsyncpa [#allocation4], 0  ;;  %s15_s11 = sshll.u32 %s218_s0, 4  ;;  %s189_s12 = smov [#allocation2]   ;;  %s16_s11 = int_to_ptr.hbm [resolvable:$true] %s15_s11 }
   0x3   :  { %s17_s13 = sshll.u32 %s189_s12, 4  ;;  %s25_s16 = sshll.u32 %s219_s1, 4  ;;  %s18_s13 = int_to_ptr.vmem [resolvable:$true] %s17_s13  ;;  %s26_s16 = int_to_ptr.hbm [resolvable:$true] %s25_s16 }
   0x4   :  { %20 = dma.hbm_to_vmem [thread:$0]  %s16_s11, 128, %s18_s13, [#allocation3]  }
   0x5   :  { %s190_s17 = smov [#allocation5]   ;;  %s191_s19 = smov 128  }
   0x6   :  { %s27_s18 = sshll.u32 %s190_s17, 4  ;;  %s192_s20 = smov 8   ;;  %s28_s18 = int_to_ptr.vmem [resolvable:$true] %s27_s18 }
   0x7   :  { %33 = dma.hbm_to_vmem [thread:$0]  %s26_s16, 2048, %s28_s18, [#allocation6], %s191_s19, %s191_s19, %s192_s20  }
   0x8   :  { %183 = dma.done.wait [#allocation3], 128  }
   0x9   :  { %184 = vsyncadd [#allocation3], 4294967168 }
   0xa   :  { %185 = dma.done.wait [#allocation6], 2048  }
   0xb   :  { %186 = vsyncadd [#allocation6], 4294965248  ;;  %v64_v0 = vld [vmem:[#allocation5 + $0x78] sm:$0xff]  ;;  %v63_v1 = vld [vmem:[#allocation5 + $0x70] sm:$0xff]  ;;  %s193_s0 = smov [#allocation7]   ;;  %s94_s23 = sshll.u32 %s220_s2, 4  ;;  %s95_s23 = int_to_ptr.hbm [resolvable:$true] %s94_s23 }
   0xc   :  { %65 = vmatpush.msra.mxu0 %v64_v0  ;;  %v62_v2 = vld [vmem:[#allocation5 + $0x68] sm:$0xff]  ;;  %v61_v3 = vld [vmem:[#allocation5 + $0x60] sm:$0xff]  ;;  %v60_v4 = vld [vmem:[#allocation5 + $0x58] sm:$0xff]  ;;  %s92_s1 = sshll.u32 %s193_s0, 4  ;;  %s93_s1 = int_to_ptr.vmem [resolvable:$true] %s92_s1 }
   0xd   :  { %v59_v5 = vld [vmem:[#allocation5 + $0x50] sm:$0xff]  ;;  %v58_v6 = vld [vmem:[#allocation5 + $0x48] sm:$0xff]  ;;  %v57_v7 = vld [vmem:[#allocation5 + $0x40] sm:$0xff] }
   0xe   :  { %66 = vmatpush.msra.mxu0 %v63_v1  ;;  %v56_v8 = vld [vmem:[#allocation5 + $0x38] sm:$0xff]  ;;  %v55_v9 = vld [vmem:[#allocation5 + $0x30] sm:$0xff]  ;;  %v54_v10 = vld [vmem:[#allocation5 + $0x28] sm:$0xff] }
   0xf   :  { %v53_v11 = vld [vmem:[#allocation5 + $0x20] sm:$0xff]  ;;  %v52_v12 = vld [vmem:[#allocation5 + $0x18] sm:$0xff]  ;;  %v51_v13 = vld [vmem:[#allocation5 + $0x10] sm:$0xff] }
  0x10   :  { %67 = vmatpush.msra.mxu0 %v62_v2  ;;  %v50_v14 = vld [vmem:[#allocation5 + $0x8] sm:$0xff]  ;;  %v49_v15 = vld [vmem:[#allocation5] sm:$0xff]  ;;  %v48_v16 = vld [vmem:[#allocation2] sm:$0xff] }
  0x12   :  { %68 = vmatpush.msra.mxu0 %v61_v3 }
  0x14   :  { %69 = vmatpush.msra.mxu0 %v60_v4 }
  0x16   :  { %70 = vmatpush.msra.mxu0 %v59_v5 }
  0x18   :  { %71 = vmatpush.msra.mxu0 %v58_v6 }
  0x1a   :  { %72 = vmatpush.msra.mxu0 %v57_v7 }
  0x1c   :  { %73 = vmatpush.msra.mxu0 %v56_v8 }
  0x1e   :  { %74 = vmatpush.msra.mxu0 %v55_v9 }
  0x20   :  { %75 = vmatpush.msra.mxu0 %v54_v10 }
  0x22   :  { %76 = vmatpush.msra.mxu0 %v53_v11 }
  0x24   :  { %77 = vmatpush.msra.mxu0 %v52_v12 }
  0x26   :  { %78 = vmatpush.msra.mxu0 %v51_v13 }
  0x28   :  { %79 = vmatpush.msra.mxu0 %v50_v14 }
  0x2a   :  { %80 = vmatpush.msra.mxu0 %v49_v15 }
  0x2b   :  { %81 = vmatmul.f32.vlgmr.msra.gmra.mxu0 %v48_v16 }
  0xa8   :  { %v82_v17 = vpop.f32.mrf.mxu0 }
  0xa9   :  { %86 = vst [vmem:[#allocation7] sm:$0xff] %v82_v17 }
  0xaa   :  { %97 = dma.vmem_to_hbm [thread:$0]  %s93_s1, 128, %s95_s23, [#allocation4]  }
  0xab   :  { %187 = dma.done.wait [#allocation4], 128  }
  0xac   :  { %188 = vsyncadd [#allocation4], 4294967168 }
  0xad   :  { %102 = vsyncpa [#allocation3], 1 }
  0xae   :  { %103 = vsyncpa [#allocation6], 1 }
  0xaf   :  { %104 = vsyncpa [#allocation4], 1 }

</bundles_post_ra>
